<compile_context>
chip_gen: v5e
topology: v5e:2x2
jax: 0.10.0
libtpu: 0.0.40
codegen_flags: <defaults>
</compile_context>

<pallas_src>
import jax
import jax.numpy as jnp
from jax.experimental import pallas as pl
from jax.experimental.pallas import tpu as pltpu


# ----------------------------- kernels -------------------------------------


def _drop_path_kernel(scale_ref, x_ref, o_ref):
    """o = x * per_sample_scale (scale broadcast over the lane axis).

    scale_ref: (Bt, 1) f32 per-sample scale (0.0 or 1/keep_prob).
    x_ref/o_ref: (Bt, Lt) lane-dense tile of the flattened input/output.
    """
    o_ref[...] = (x_ref[...] * scale_ref[...]).astype(o_ref.dtype)


def _drop_path_add_kernel(scale_ref, x_ref, r_ref, o_ref):
    """Fused residual variant: o = residual + x * per_sample_scale."""
    o_ref[...] = (r_ref[...] + x_ref[...] * scale_ref[...]).astype(o_ref.dtype)


# --------------------------- tile selection ---------------------------------


def _sublane_multiple(dtype):
    # Sub-32-bit dtypes pack 2/4 rows per sublane; align Bt to the packed unit
    # to avoid relayout filler on bf16 / int8 / fp8 activations.
    itemsize = jnp.dtype(dtype).itemsize
    return {4: 8, 2: 16, 1: 32}.get(itemsize, 8)


def _default_target_bytes():
    """Per-buffer tile-byte target, best-effort tuned per TPU generation."""
    try:
        kind = jax.devices()[0].device_kind.lower()
    except Exception:
        return 4 << 20
    if "v7" in kind:
        return 6 << 20       # 3.2 TB/s HBM: bigger tiles amortize per-step cost
    if "v5 lite" in kind or "v5e" in kind or "v5litepod" in kind:
        return 2 << 20       # v5e sweet spot
    return 4 << 20           # v6e and friends: already at the memory wall here


def _choose_blocks(B, L, dtype, target_bytes):
    """Lane-first (Bt, Lt) tile chooser.

    Bt: minimum legal sublane pack for dtype (or the whole small batch).
    Lt: as wide as the byte budget allows, multiple of 128 (or full L).
    Leftover budget is spent on more rows only once Lt spans all of L.
    A single-block grid is split so both v7x TensorCores get work.
    """
    itemsize = jnp.dtype(dtype).itemsize
    sub = _sublane_multiple(dtype)

    Bt = sub if B >= sub else B

    if L <= 128:
        Lt = L
        L_pad = L
    else:
        L_pad = pl.cdiv(L, 128) * 128
        lane_budget = (target_bytes // (Bt * itemsize)) // 128 * 128
        Lt = int(min(max(128, lane_budget), L_pad))

    if Lt >= L_pad:
        # Whole lane extent fits in one tile: grow the row count instead.
        row_budget = target_bytes // max(Lt * itemsize, 1)
        if B >= sub and row_budget > Bt:
            B_pad = pl.cdiv(B, sub) * sub
            Bt = int(min(max((row_budget // sub) * sub, sub), B_pad))

    # Guarantee >= 2 grid blocks along a "parallel" axis where feasible so the
    # two TensorCores on v7x both get work (harmless extra step on 1-TC chips).
    if pl.cdiv(B, Bt) * pl.cdiv(L, Lt) == 1:
        if L > 128 and Lt >= 256:
            Lt = max(128, ((Lt // 2 + 127) // 128) * 128)
        elif B >= 2 * sub:
            Bt = max(sub, ((Bt // 2) // sub) * sub)

    return Bt, Lt


# ------------------------------ wrapper -------------------------------------


def drop_path(x, drop_prob, training, key, residual=None, target_bytes=None):
    """JAX/Pallas equivalent of DropPath.forward (training flag explicit).

    drop_prob / training must be static Python values (as in the nn.Module).
    If `residual` is given, returns residual + drop_path(x) fused in one pass.
    """
    if drop_prob is None or drop_prob == 0.0 or not training:
        return x if residual is None else x + residual

    keep_prob = 1.0 - drop_prob
    B = x.shape[0]
    L = 1
    for d in x.shape[1:]:
        L *= d

    # Per-sample binarized keep mask, matching torch: floor(keep_prob + U[0,1)).
    u = jax.random.uniform(key, (B,), dtype=jnp.float32)
    mask = jnp.floor(keep_prob + u)
    # Keep scale in f32 (don't round 1/keep_prob into bf16); multiply upcasts.
    scale = (mask / keep_prob).reshape(B, 1)

    x2d = x.reshape(B, L)
    itemsize = jnp.dtype(x.dtype).itemsize
    if target_bytes is None:
        target_bytes = _default_target_bytes()
    Bt, Lt = _choose_blocks(B, L, x.dtype, target_bytes)
    grid = (pl.cdiv(B, Bt), pl.cdiv(L, Lt))

    data_spec = pl.BlockSpec((Bt, Lt), lambda i, j: (i, j))
    scale_spec = pl.BlockSpec((Bt, 1), lambda i, j: (i, 0))

    if residual is None:
        kernel = _drop_path_kernel
        operands = (scale, x2d)
        in_specs = [scale_spec, data_spec]
        n_streams = 2        # x in + out
        flops = B * L
    else:
        kernel = _drop_path_add_kernel
        operands = (scale, x2d, residual.reshape(B, L))
        in_specs = [scale_spec, data_spec, data_spec]
        n_streams = 3        # x + residual in, out
        flops = 2 * B * L

    # Double-buffered streams + margin; keep within v7x's 64 MiB physical VMEM.
    tile_bytes = Bt * Lt * itemsize
    vmem_limit = int(min(max(2 * n_streams * tile_bytes + (4 << 20), 32 << 20),
                         48 << 20))

    out = pl.pallas_call(
        kernel,
        out_shape=jax.ShapeDtypeStruct((B, L), x.dtype),
        grid=grid,
        in_specs=in_specs,
        out_specs=data_spec,
        compiler_params=pltpu.CompilerParams(
            dimension_semantics=("parallel", "parallel"),
            vmem_limit_bytes=vmem_limit,
        ),
        cost_estimate=pl.CostEstimate(
            flops=flops,
            transcendentals=0,
            bytes_accessed=n_streams * B * L * itemsize + B * 4,
        ),
    )(*operands)
    return out.reshape(x.shape)


# ------------------------------- test ---------------------------------------


if __name__ == "__main__":
    key = jax.random.PRNGKey(0)
    k_x, k_r, k_drop = jax.random.split(key, 3)

    B, N, D = 2, 8, 32
    drop_prob = 0.25
    keep_prob = 1.0 - drop_prob

    # Same RNG draw as the kernel wrapper uses (for the reference).
    u = jax.random.uniform(k_drop, (B,), dtype=jnp.float32)
    mask = jnp.floor(keep_prob + u).reshape(B, 1, 1)

    # ---- f32, training mode ----
    x = jax.random.normal(k_x, (B, N, D), dtype=jnp.float32)
    y_train = jax.block_until_ready(drop_path(x, drop_prob, training=True, key=k_drop))
    y_ref = x / keep_prob * mask
    assert jnp.allclose(y_train, y_ref, rtol=1e-5, atol=1e-5), "f32 mismatch vs reference"

    # ---- bf16, training mode (scale stays f32; compute upcasts) ----
    xb = x.astype(jnp.bfloat16)
    yb = jax.block_until_ready(drop_path(xb, drop_prob, training=True, key=k_drop))
    yb_ref = (xb.astype(jnp.float32) * (mask / keep_prob)).astype(jnp.bfloat16)
    assert jnp.allclose(yb.astype(jnp.float32), yb_ref.astype(jnp.float32),
                        rtol=1e-2, atol=1e-2), "bf16 mismatch vs reference"

    # ---- fused residual variant: y = residual + drop_path(x) ----
    r = jax.random.normal(k_r, (B, N, D), dtype=jnp.float32)
    y_fused = jax.block_until_ready(
        drop_path(x, drop_prob, training=True, key=k_drop, residual=r))
    assert jnp.allclose(y_fused, r + y_ref, rtol=1e-5, atol=1e-5), "fused residual mismatch"

    # ---- eval mode / p=0: identity ----
    y_eval = jax.block_until_ready(drop_path(x, drop_prob, training=False, key=k_drop))
    assert jnp.allclose(y_eval, x), "eval mode must be identity"
    y_p0 = jax.block_until_ready(drop_path(x, 0.0, training=True, key=k_drop))
    assert jnp.allclose(y_p0, x), "p=0 must be identity"

    print("KERNEL_OK")
</pallas_src>

<mosaic_0001>
module attributes {stable_mosaic.version = 11 : i64} {
  func.func @_drop_path_kernel(%arg0: i32, %arg1: i32, %arg2: memref<2x1xf32, #tpu.memory_space<vmem>>, %arg3: memref<2x128xf32, #tpu.memory_space<vmem>>, %arg4: memref<2x128xf32, #tpu.memory_space<vmem>>) attributes {dimension_semantics = [#tpu.dimension_semantics<parallel>, #tpu.dimension_semantics<parallel>], iteration_bounds = array<i64: 1, 2>, scalar_prefetch = 0 : i64, scratch_operands = 0 : i64, tpu.core_type = #tpu.core_type<tc>, window_params = [{transform_indices = @transform_0, window_bounds = array<i64: 2, 1>}, {transform_indices = @transform_1, window_bounds = array<i64: 2, 128>}, {transform_indices = @transform_2, window_bounds = array<i64: 2, 128>}]} {
    %c0 = arith.constant 0 : index
    %c0_0 = arith.constant 0 : index
    %0 = vector.load %arg3[%c0, %c0_0] : memref<2x128xf32, #tpu.memory_space<vmem>>, vector<2x128xf32>
    %c0_1 = arith.constant 0 : index
    %c0_2 = arith.constant 0 : index
    %1 = vector.load %arg2[%c0_1, %c0_2] : memref<2x1xf32, #tpu.memory_space<vmem>>, vector<2x1xf32>
    %2 = vector.broadcast %1 : vector<2x1xf32> to vector<2x128xf32>
    %3 = arith.mulf %0, %2 : vector<2x128xf32>
    %c0_3 = arith.constant 0 : index
    %c0_4 = arith.constant 0 : index
    %4 = vector.load %arg4[%c0_3, %c0_4] : memref<2x128xf32, #tpu.memory_space<vmem>>, vector<2x128xf32>
    tpu.vector_store %arg4[%c0_3, %c0_4], %3 {strides = array<i32>} : memref<2x128xf32, #tpu.memory_space<vmem>>, vector<2x128xf32>,
    return
  }
  func.func @transform_0(%arg0: i32, %arg1: i32) -> (i32, i32) {
    %c0_i32 = arith.constant 0 : i32
    %c0_i32_0 = arith.constant 0 : i32
    return %arg0, %c0_i32 : i32, i32
  }
  func.func @transform_1(%arg0: i32, %arg1: i32) -> (i32, i32) {
    %c0_i32 = arith.constant 0 : i32
    return %arg0, %arg1 : i32, i32
  }
  func.func @transform_2(%arg0: i32, %arg1: i32) -> (i32, i32) {
    %c0_i32 = arith.constant 0 : i32
    return %arg0, %arg1 : i32, i32
  }
}

</mosaic_0001>

<bundles_post_ra>
// kernel: tpu_custom_call.1
= control target key start
LH: loop header
LB: loop body
LE: loop exit
PB: predicated region body
PF: predicated region fallthrough
CT: control target
= control target key end

     0   :  { %7 = vsyncpa [#allocation3], 0  ;;  %s651_s0 = inlined_call_operand.vmem [shape: f32[2,1], index: 0, kind: input, shape index: {}]   ;;  %s652_s1 = inlined_call_operand.hbm [shape: f32[2,256], index: 1, kind: input, shape index: {}]   ;;  %s653_s2 = inlined_call_operand.hbm [shape: f32[2,256], index: 2, kind: output, shape index: {}]  }
   0x1   :  { %9 = vsyncpa [#allocation3 + $0x1], 0 }
   0x2   :  { %10 = vsyncpa [#allocation4], 0 }
   0x3   :  { %12 = vsyncpa [#allocation4 + $0x1], 0  ;;  %s528_s9 = smov 0   ;;  %s530_s10 = smov 0  }
   0x4   :  { %s532_s11 = smov 0   ;;  %s534_s12 = smov 0  }
   0x5   :  { %s536_s13 = smov 0   ;;  %s538_s14 = smov 0  }
   0x6 LB: > { %s320_s15 = sadd.s32 4294967295, %s510_s14   ;;  %s321_s16 = sadd.s32 4294967294, %s510_s14   ;;  %s510_s14 = sphi %s538_s14, %s18_s14   ;;  %s506_s13 = sphi %s536_s13, %s662_s13   ;;  %s502_s12 = sphi %s534_s12, %s661_s12   ;;  %s498_s11 = sphi %s532_s11, %s660_s11   ;;  %s494_s10 = sphi %s530_s10, %s659_s10   ;;  %s490_s9 = sphi %s528_s9, %s658_s9  }
   0x7   : > { %s27_s17 = sadd.s32 1, %s506_s13  ;;  %s65_s18 = sadd.s32 1, %s498_s11 }
   0x8   : > { %p28_p0 = scmp.ge.s32.totalorder %s27_s17, 2  ;;  %p72_p1 = scmp.ne.s32.totalorder %s498_s11, %s494_s10 }
   0x9   : > { %p73_p2 = scmp.eq.s32.totalorder %s510_s14, 0  ;;  %p78_p3 = scmp.ne.s32.totalorder %s494_s10, %s490_s9 }
   0xa   : > { %s664_s17 = smov (%p28_p0, %s27_s17), 0  ;;  %p79_p5 = scmp.eq.s32.totalorder %s320_s15, 0 }
   0xb   : > { %p569_p4 = por %p73_p2, %p72_p1  ;;  %s61_s20 = ssub.s32 %s506_s13, %s664_s17 }
   0xc   : > { %p104_p6 = scmp.eq.s32.totalorder %s320_s15, 1  ;;  %p63_p7 = scmp.eq.s32.totalorder %s61_s20, 0 }
   0xd   : > { %p575_p8 = por %p79_p5, %p78_p3  ;;  %p110_p10 = scmp.eq.s32.totalorder %s321_s16, 1 }
   0xe   : > { %p579_p9 = por %p104_p6, %p72_p1  ;;  %p324_p12 = scmp.ge.s32.totalorder %s510_s14, 2 }
   0xf   : > { %s584_s23 = scalar_select %p63_p7, %s498_s11, %s65_s18  }
  0x10   : > { %p586_p11 = por %p110_p10, %p78_p3  ;;  %p346_p13 = scmp.lt.s32.totalorder %s510_s14, 2 }
  0x11   : > { %s137_s25 = sand.u32 1, %s498_s11   ;;  %s326_s27 = sshll.u32 %s506_s13, 1 }
  0x12   : > { %s325_s26 = sshll.u32 %s137_s25, 1  ;;  %s147_s30 = scalar_lea.hbm %s652_s1, %s326_s27 }
  0x13   : > { %s141_s3 = scalar_lea.vmem [#allocation2], %s325_s26  ;;  %s149_s5 = sshll.u32 %s147_s30, 4  ;;  %s150_s5 = int_to_ptr.hbm [resolvable:$true] %s149_s5 }
  0x14   : > { %s151_s4 = sshll.u32 %s141_s3, 4  ;;  %p339_p0 = pnand %p346_p13, %p569_p4  ;;  %s152_s4 = int_to_ptr.vmem [resolvable:$true] %s151_s4 }
  0x15   : > { %p327_p1 = scmp.ge.s32.totalorder %s510_s14, 1  ;;  %p156_p2 = scmp.lt.s32.totalorder %s510_s14, 3 }
  0x16   : > { %s138_s6 = scalar_lea.sflag [#allocation3], %s137_s25 }
  0x17   : > { %341 = dma.hbm_to_vmem [thread:$0]  (!%p339_p0), %s150_s5, 32, %s152_s4, %s138_s6  }
  0x18   : > { %p157_p3 = pnand %p327_p1, %p156_p2 }
  0x19   : > { %s602_s7 = sand.u32 (!%p157_p3), 1, %s494_s10  }
  0x1a   : > { %160 = sbr.rel (%p157_p3) target bundleno = 154 (0x9a), region = 28  ;;  %s328_s8 = sshll.u32 (!%p157_p3), %s602_s7, 1 }
  0x1b   : > { %s163_s15 = scalar_lea.sflag (!%p157_p3), [#allocation3], %s602_s7  ;;  %s166_s16 = scalar_lea.vmem (!%p157_p3), [#allocation2], %s328_s8 }
  0x1f   : > { %481 = dma.done.wait (%p575_p8), %s163_s15, 32  }
  0x20   : > { %483 = vsyncadd (%p575_p8), %s163_s15, 4294967264  ;;  %v512_v0 = vmov 0   ;;  %v197_v1 = vld [vmem:[%s651_s0] sm:$0x3]  ;;  %s331_s20 = sshll.u32 %s502_s12, 1  ;;  %s191_s28 = scalar_lea.vmem [#allocation5], %s328_s8 }
  0x21   : > { %397 = vset.pattern.permute.xlu0 %v512_v0  ;;  %s218_s27 = scalar_lea.hbm %s653_s2, %s331_s20  ;;  %v196_v2 = vld [vmem:[%s166_s16] sm:$0x3]  ;;  %s220_s29 = sshll.u32 %s191_s28, 4  ;;  %s221_s29 = int_to_ptr.vmem [resolvable:$true] %s220_s29 }
  0x22   : > { %200 = vperm.xlu0 %397, %v197_v1   ;;  %s222_s21 = sshll.u32 %s218_s27, 4  ;;  %s206_s30 = scalar_lea.sflag [#allocation4], %s602_s7  ;;  %s223_s21 = int_to_ptr.hbm [resolvable:$true] %s222_s21 }
  0x23   : > { %s442_s3 = sshra.s32 %s223_s21, 4  ;;  %s448_s6 = scalar_lea.hbm %s653_s2, 4  ;;  %s443_s3 = int_to_ptr.hbm [resolvable:$true] %s442_s3 }
  0x24   : > { %s444_s4 = scalar_lea.hbm %s443_s3, 2  ;;  %p449_p7 = scmp.lt.s32.totalorder %s443_s3, %s653_s2 }
  0x25   : > { %p445_p4 = scmp.ne.s32.totalorder %s443_s3, %s444_s4  ;;  %p450_p8 = scmp.lt.s32.totalorder %s448_s6, %s444_s4 }
  0x27   : > { %p446_p5 = pnand %p445_p4, %p579_p9  ;;  %p451_p10 = por %p450_p8, %p449_p7 }
  0x29   : > { %p447_p6 = pneg %p446_p5 }
  0x2b   : > { %p452_p13 = pnand %p451_p10, %p447_p6 }
  0x94   : > { %v201_v3 = vpop.permute.xlu0 %200 }
  0x95   : > { %v203_v4 = vmul.f32 %v201_v3, %v196_v2 }
  0x97   : > { %204 = vst [vmem:[%s191_s28] sm:$0x3] %v203_v4 }
  0x98   : > { %455 = shalt.err (!%p452_p13)
}
  0x99   : > { %336 = dma.vmem_to_hbm [thread:$0]  (%p579_p9), %s221_s29, 32, %s223_s21, %s206_s30  }
  0x9a PF: > { %s234_s7 = sand.u32 1, %s490_s9   ;;  %p343_p0 = pnand %p324_p12, %p586_p11 }
  0x9b   : > { %s235_s16 = scalar_lea.sflag [#allocation4], %s234_s7 }
  0x9c   : > { %p344_p1 = pneg %p343_p0 }
  0x9e   : > { %485 = dma.done.wait (%p344_p1), %s235_s16, 32  }
  0x9f   : > { %487 = vsyncadd (%p344_p1), %s235_s16, 4294967264  ;;  %s18_s14 = sadd.s32 1, %s510_s14   ;;  %s658_s9 = smov %s494_s10 }
  0xa0   : > { %p15_p2 = scmp.ge.s32.totalorder %s18_s14, 4   ;;  %s659_s10 = smov %s498_s11 }
  0xa1   : > { %s660_s11 = smov %s584_s23  ;;  %s661_s12 = smov %s506_s13 }
  0xa2   : > { %s662_s13 = smov %s664_s17  ;;  %17 = sbr.rel (!%p15_p2) target bundleno = 6 (0x6), region = 76 }
  0xa7   :  { %241 = vsyncpa [#allocation3], 1 }
  0xa8   :  { %243 = vsyncpa [#allocation3 + $0x1], 1 }
  0xa9   :  { %244 = vsyncpa [#allocation4], 1 }
  0xaa   :  { %246 = vsyncpa [#allocation4 + $0x1], 1 }

</bundles_post_ra>
